<compile_context>
chip_gen: v7x
topology: tpu7x:2x2x1
jax: 0.10.0
libtpu: 0.0.40
codegen_flags: <defaults>
</compile_context>

<pallas_src>
import math
from functools import partial

import numpy as np
import jax
import jax.numpy as jnp
from jax.experimental import pallas as pl
from jax.experimental.pallas import tpu as pltpu

# ----------------------------------------------------------------------------
# Small synthetic config (real Chroma: hidden=3072, depth=19/38, etc.)
# ----------------------------------------------------------------------------
CFG = dict(
    in_channels=16,        # = C * patch^2 (C=4, patch=2)
    out_channels=16,       # = C * patch^2
    context_in_dim=32,
    hidden_size=64,
    mlp_ratio=4.0,
    num_heads=4,
    depth=1,
    depth_single_blocks=1,
    axes_dim=[4, 6, 6],    # sum == head_dim == 16
    theta=10000,
    patch_size=2,
    qkv_bias=True,
    in_dim=64,             # 16 (timestep) + 16 (guidance) + 32 (mod index)
    out_dim=64,            # == hidden_size (modulation vectors)
    hidden_dim=64,
    n_layers=2,
)

COMPUTE_DTYPE = jnp.bfloat16          # bf16 data, f32 accumulation/statistics
_VMEM_LIMIT = 32 * 1024 * 1024        # fits v5e/v6e/v7x scoped VMEM
_NEG_INF = -1e30


def _round_up(x, m):
    return (x + m - 1) // m * m


def _row_tile(n, cap=512):
    """Row tile: the (8-rounded) full extent when small, else 256."""
    r = _round_up(n, 8)
    return r if r <= cap else 256


def _col_tile(n):
    """Output-column tile; lane-dense (>=128) and divides real-Chroma dims."""
    if n < 128:
        return 128          # pad small outputs to a full lane width
    if n <= 256:
        return n
    if n <= 1024:
        return 256
    return 512


def _k_tile(k, norm):
    """Contraction tile; norm prologues need full rows."""
    if norm is not None or k <= 256:
        return k
    if k <= 1024:
        return 256
    return 512


# ----------------------------------------------------------------------------
# Fused linear kernel:
#   [cached norm/mod prologue] -> matmul (optional K tiling, f32 acc)
#   -> [bias, activation, column-masked GELU, gate*out + residual epilogue]
# ----------------------------------------------------------------------------
def _fused_linear_kernel(spec, *refs):
    (norm, act, has_gate, has_res, gelu_from, tn, single_k, cache_x) = spec
    refs = list(refs)
    x_ref = refs.pop(0)
    shift_ref = scale_ref = gamma_ref = None
    if norm == "layer":
        shift_ref = refs.pop(0)
        scale_ref = refs.pop(0)
    elif norm == "rms":
        gamma_ref = refs.pop(0)
    w_ref = refs.pop(0)
    b_ref = refs.pop(0)
    gate_ref = refs.pop(0) if has_gate else None
    res_ref = refs.pop(0) if has_res else None
    o_ref = refs.pop(0)
    xn_ref = refs.pop(0) if cache_x else None
    acc_ref = refs.pop(0) if not single_k else None

    j = pl.program_id(2)
    k = pl.program_id(3)

    def prologue():
        xf = x_ref[0].astype(jnp.float32)
        if norm == "layer":
            mu = jnp.mean(xf, axis=-1, keepdims=True)
            var = jnp.mean(jnp.square(xf - mu), axis=-1, keepdims=True)
            xf = (xf - mu) * jax.lax.rsqrt(var + 1e-6)
            xf = (xf * (1.0 + scale_ref[0].astype(jnp.float32))
                  + shift_ref[0].astype(jnp.float32))
        elif norm == "rms":
            ms = jnp.mean(jnp.square(xf), axis=-1, keepdims=True)
            xf = xf * jax.lax.rsqrt(ms + 1e-6) * gamma_ref[0].astype(jnp.float32)
        return xf.astype(w_ref.dtype)

    if cache_x:
        # The normalized rows are identical for every output-column tile j:
        # compute them once and reuse from VMEM for all other j.
        @pl.when(jnp.logical_and(j == 0, k == 0))
        def _():
            xn_ref[...] = prologue()
        x = xn_ref[...]
    elif norm is not None:
        x = prologue()
    else:
        x = x_ref[0]

    def epilogue(y):
        y = y + b_ref[...].astype(jnp.float32)
        if act == "gelu":
            y = jax.nn.gelu(y, approximate=True)
        elif act == "silu":
            y = jax.nn.silu(y)
        if gelu_from is not None:
            cols = jax.lax.broadcasted_iota(jnp.int32, y.shape, 1) + j * tn
            y = jnp.where(cols >= gelu_from,
                          jax.nn.gelu(y, approximate=True), y)
        if has_gate:
            y = gate_ref[0].astype(jnp.float32) * y
        if has_res:
            y = y + res_ref[0].astype(jnp.float32)
        return y.astype(o_ref.dtype)

    if single_k:
        o_ref[0] = epilogue(
            jnp.dot(x, w_ref[...], preferred_element_type=jnp.float32))
    else:
        @pl.when(k == 0)
        def _init():
            acc_ref[...] = jnp.zeros_like(acc_ref)

        acc_ref[...] += jnp.dot(x, w_ref[...],
                                preferred_element_type=jnp.float32)

        @pl.when(k == pl.num_programs(3) - 1)
        def _finalize():
            o_ref[0] = epilogue(acc_ref[...])


def fused_linear(x, w, b, *, norm=None, shift=None, scale=None, norm_scale=None,
                 gate=None, residual=None, activation=None, gelu_from=None):
    """y = epilogue( prologue(x) @ w + b ) for x of shape (B, L, K)."""
    B, L, K = x.shape
    N = w.shape[1]
    out_dtype = x.dtype

    TM = _row_tile(L)
    Lp = _round_up(L, TM)
    TN = _col_tile(N)
    Np = _round_up(N, TN)
    TK = _k_tile(K, norm)
    Kp = _round_up(K, TK)
    num_j = Np // TN
    num_k = Kp // TK
    single_k = num_k == 1
    cache_x = (norm is not None) and (num_j > 1)

    # These pads are skipped (plain Python `if`) when tiles divide the real
    # dims; at full Chroma size only the final layer (N=64 -> 128) pads.
    xp = x if (Lp == L and Kp == K) else jnp.pad(
        x, ((0, 0), (0, Lp - L), (0, Kp - K)))
    wp = w if (Kp == K and Np == N) else jnp.pad(
        w, ((0, Kp - K), (0, Np - N)))
    bp = b.reshape(1, N)
    if Np != N:
        bp = jnp.pad(bp, ((0, 0), (0, Np - N)))

    inputs = [xp]
    in_specs = [pl.BlockSpec((1, TM, TK), lambda bi, i, j, k: (bi, i, k))]
    if norm == "layer":
        inputs += [shift, scale]
        in_specs += [pl.BlockSpec((1, 1, K), lambda bi, i, j, k: (bi, 0, 0)),
                     pl.BlockSpec((1, 1, K), lambda bi, i, j, k: (bi, 0, 0))]
    elif norm == "rms":
        inputs += [norm_scale.reshape(1, 1, K)]
        in_specs += [pl.BlockSpec((1, 1, K), lambda bi, i, j, k: (0, 0, 0))]
    inputs += [wp, bp]
    in_specs += [pl.BlockSpec((TK, TN), lambda bi, i, j, k: (k, j)),
                 pl.BlockSpec((1, TN), lambda bi, i, j, k: (0, j))]

    has_gate = gate is not None
    has_res = residual is not None
    if has_gate:
        gp = gate if Np == N else jnp.pad(gate, ((0, 0), (0, 0), (0, Np - N)))
        inputs.append(gp)
        in_specs.append(pl.BlockSpec((1, 1, TN), lambda bi, i, j, k: (bi, 0, j)))
    if has_res:
        rp = residual
        if Lp != L or Np != N:
            rp = jnp.pad(rp, ((0, 0), (0, Lp - L), (0, Np - N)))
        inputs.append(rp)
        in_specs.append(pl.BlockSpec((1, TM, TN), lambda bi, i, j, k: (bi, i, j)))

    scratch = []
    if cache_x:
        scratch.append(pltpu.VMEM((TM, Kp), COMPUTE_DTYPE))
    if not single_k:
        scratch.append(pltpu.VMEM((TM, TN), jnp.float32))

    spec = (norm, activation, has_gate, has_res, gelu_from, TN, single_k, cache_x)
    out = pl.pallas_call(
        partial(_fused_linear_kernel, spec),
        out_shape=jax.ShapeDtypeStruct((B, Lp, Np), out_dtype),
        grid=(B, Lp // TM, num_j, num_k),
        in_specs=in_specs,
        out_specs=pl.BlockSpec((1, TM, TN), lambda bi, i, j, k: (bi, i, j)),
        scratch_shapes=scratch,
        compiler_params=pltpu.CompilerParams(
            # j / k must iterate sequentially (prologue cache, accumulator).
            dimension_semantics=("parallel", "parallel", "arbitrary", "arbitrary"),
            vmem_limit_bytes=_VMEM_LIMIT),
    )(*inputs)
    if Lp != L or Np != N:
        out = out[:, :L, :N]
    return out


# ----------------------------------------------------------------------------
# Flash attention with fused per-head QK RMSNorm + RoPE (rotate-half layout)
# ----------------------------------------------------------------------------
def _flash_attn_kernel(spec, q_ref, qg_ref, cq_ref, sq_ref,
                       k_ref, kg_ref, ck_ref, sk_ref, v_ref,
                       o_ref, qp_ref, m_ref, l_ref, acc_ref):
    scale, kv_len, tk, need_mask = spec
    ki = pl.program_id(2)
    half = q_ref.shape[-1] // 2

    def norm_rope(x, g_ref, c_ref, s_ref):
        x = x.astype(jnp.float32)
        ms = jnp.mean(jnp.square(x), axis=-1, keepdims=True)
        x = x * jax.lax.rsqrt(ms + 1e-6) * g_ref[...]
        x_rot = jnp.concatenate([x[:, half:], x[:, :half]], axis=-1)
        return x * c_ref[...] + x_rot * s_ref[...]

    @pl.when(ki == 0)
    def _init():
        qp_ref[...] = norm_rope(q_ref[0], qg_ref, cq_ref, sq_ref
                                ).astype(qp_ref.dtype)
        m_ref[...] = jnp.full_like(m_ref, _NEG_INF)
        l_ref[...] = jnp.zeros_like(l_ref)
        acc_ref[...] = jnp.zeros_like(acc_ref)

    k = norm_rope(k_ref[0], kg_ref, ck_ref, sk_ref).astype(v_ref.dtype)
    s = jax.lax.dot_general(qp_ref[...], k, (((1,), (1,)), ((), ())),
                            preferred_element_type=jnp.float32) * scale
    if need_mask:
        cols = jax.lax.broadcasted_iota(jnp.int32, s.shape, 1) + ki * tk
        s = jnp.where(cols < kv_len, s, _NEG_INF)

    m_prev = m_ref[...]
    m_new = jnp.maximum(m_prev, jnp.max(s, axis=-1, keepdims=True))
    alpha = jnp.exp(m_prev - m_new)
    p = jnp.exp(s - m_new)
    l_ref[...] = alpha * l_ref[...] + jnp.sum(p, axis=-1, keepdims=True)
    acc_ref[...] = alpha * acc_ref[...] + jnp.dot(
        p.astype(v_ref.dtype), v_ref[0], preferred_element_type=jnp.float32)
    m_ref[...] = m_new

    @pl.when(ki == pl.num_programs(2) - 1)
    def _finalize():
        o_ref[0] = (acc_ref[...]
                    * pl.reciprocal(l_ref[...], approx=True)).astype(o_ref.dtype)


def pallas_flash_attention(q, k, v, q_gamma, k_gamma, cos_tab, sin_tab):
    """q,k,v: (B, H, N, D) raw (pre-QKNorm, pre-RoPE); tables: (N, D) f32.
    Returns (B, N, H*D)."""
    B, H, N, D = q.shape
    scale = 1.0 / math.sqrt(D)
    Nr = _round_up(N, 8)
    if Nr <= 512:
        TQ = TK = Nr
        Np = Nr
    else:
        TQ, TK = 512, 256          # big Q tile -> each KV element re-read less
        Np = _round_up(N, TQ)
    need_mask = Np != N

    qf = q.reshape(B * H, N, D)
    kf = k.reshape(B * H, N, D)
    vf = v.reshape(B * H, N, D)
    if Np != N:
        pad = ((0, 0), (0, Np - N), (0, 0))
        qf, kf, vf = jnp.pad(qf, pad), jnp.pad(kf, pad), jnp.pad(vf, pad)
        tpad = ((0, Np - N), (0, 0))
        q_gamma = jnp.pad(q_gamma, tpad, constant_values=1.0)
        k_gamma = jnp.pad(k_gamma, tpad, constant_values=1.0)
        cos_tab = jnp.pad(cos_tab, tpad, constant_values=1.0)
        sin_tab = jnp.pad(sin_tab, tpad)

    q_spec = pl.BlockSpec((1, TQ, D), lambda bh, qi, ki: (bh, qi, 0))
    qtab = pl.BlockSpec((TQ, D), lambda bh, qi, ki: (qi, 0))
    k_spec = pl.BlockSpec((1, TK, D), lambda bh, qi, ki: (bh, ki, 0))
    ktab = pl.BlockSpec((TK, D), lambda bh, qi, ki: (ki, 0))

    out = pl.pallas_call(
        partial(_flash_attn_kernel, (scale, N, TK, need_mask)),
        out_shape=jax.ShapeDtypeStruct((B * H, Np, D), q.dtype),
        grid=(B * H, Np // TQ, Np // TK),
        in_specs=[q_spec, qtab, qtab, qtab, k_spec, ktab, ktab, ktab, k_spec],
        out_specs=pl.BlockSpec((1, TQ, D), lambda bh, qi, ki: (bh, qi, 0)),
        scratch_shapes=[pltpu.VMEM((TQ, D), q.dtype),      # processed Q cache
                        pltpu.VMEM((TQ, 1), jnp.float32),   # m
                        pltpu.VMEM((TQ, 1), jnp.float32),   # l
                        pltpu.VMEM((TQ, D), jnp.float32)],  # acc
        compiler_params=pltpu.CompilerParams(
            dimension_semantics=("parallel", "parallel", "arbitrary"),
            vmem_limit_bytes=_VMEM_LIMIT),
    )(qf, q_gamma, cos_tab, sin_tab, kf, k_gamma, cos_tab, sin_tab, vf)
    out = out[:, :N].reshape(B, H, N, D)
    return out.transpose(0, 2, 1, 3).reshape(B, N, H * D)


# ----------------------------------------------------------------------------
# RoPE tables + q/k feature de-interleave (exactly equivalent to reference)
# ----------------------------------------------------------------------------
def rope_tables(ids, axes_dim, theta):
    """Half-layout RoPE tables (cos, sin) of shape (N, head_dim), f32.

    q/k head features are stored de-interleaved (even pair-elements first,
    odd second) by permuting the QKV weight columns at init, so in-kernel RoPE
    is x*cos + rotate_half(x)*sin.  Attention scores are invariant to a common
    permutation of q/k features, so results match the interleaved reference.
    """
    pos = ids[0].astype(jnp.float32)      # ids identical across batch in Chroma
    angles = []
    for i, dim in enumerate(axes_dim):
        sc = jnp.arange(0, dim, 2, dtype=jnp.float32) / dim
        omega = 1.0 / (float(theta) ** sc)
        angles.append(pos[:, i, None] * omega[None, :])
    ang = jnp.concatenate(angles, axis=-1)            # (N, D//2)
    cos = jnp.cos(ang)
    sin = jnp.sin(ang)
    cos2 = jnp.concatenate([cos, cos], axis=-1)        # (N, D)
    sin2 = jnp.concatenate([-sin, sin], axis=-1)       # (N, D), sign folded in
    return cos2, sin2


def _deinterleave_perm(head_dim):
    return np.concatenate([np.arange(0, head_dim, 2), np.arange(1, head_dim, 2)])


def deinterleave_qk_columns(w, b, hidden_size, head_dim):
    """Permute the q/k output columns of a fused QKV (or lin1) weight/bias so
    each head is stored in rotate-half RoPE layout (function-preserving)."""
    out_dim = w.shape[1]
    perm = np.arange(out_dim)
    ph = _deinterleave_perm(head_dim)
    n_heads = hidden_size // head_dim
    for part in range(2):                              # q and k blocks only
        for h in range(n_heads):
            base = part * hidden_size + h * head_dim
            perm[base:base + head_dim] = base + ph
    return w[:, perm], b[perm]


def _gamma_table(parts):
    """Build a per-position (N, D) f32 gamma table from [(gamma, n_rows), ...]."""
    rows = [jnp.broadcast_to(g.astype(jnp.float32)[None, :], (n, g.shape[0]))
            for g, n in parts]
    return jnp.concatenate(rows, axis=0)


# ----------------------------------------------------------------------------
# Pure-JAX glue (timestep embeddings, modulation bookkeeping, head split)
# ----------------------------------------------------------------------------
def timestep_embedding(t, dim, max_period=10000, time_factor=1000.0):
    t = time_factor * t.astype(jnp.float32)
    half = dim // 2
    freqs = jnp.exp(-math.log(max_period)
                    * jnp.arange(half, dtype=jnp.float32) / half)
    args = t[:, None] * freqs[None]
    return jnp.concatenate([jnp.cos(args), jnp.sin(args)], axis=-1)


def split_qkv(qkv, num_heads):
    B, L, three_hs = qkv.shape
    hd = three_hs // (3 * num_heads)
    qkv = qkv.reshape(B, L, 3, num_heads, hd).transpose(2, 0, 3, 1, 4)
    return qkv[0], qkv[1], qkv[2]


def _mod_out(t, offset):
    return dict(shift=t[:, offset:offset + 1],
                scale=t[:, offset + 1:offset + 2],
                gate=t[:, offset + 2:offset + 3])


def get_modulations(tensor, block_type, idx, cfg):
    if block_type == "final":
        return tensor[:, -2:-1, :], tensor[:, -1:, :]
    single_block_count = cfg["depth_single_blocks"]
    double_block_count = cfg["depth"]
    offset = 3 * idx
    if block_type == "single":
        return _mod_out(tensor, offset)
    offset *= 2
    offset += 3 * single_block_count
    if block_type == "double_txt":
        offset += 6 * double_block_count
    return _mod_out(tensor, offset), _mod_out(tensor, offset + 3)


# ----------------------------------------------------------------------------
# Sub-modules
# ----------------------------------------------------------------------------
def approximator(p, x):
    x = fused_linear(x, p["in"]["w"], p["in"]["b"])
    for layer in p["layers"]:
        y = fused_linear(x, layer["in_w"], layer["in_b"],
                         norm="rms", norm_scale=layer["norm"],
                         activation="silu")
        x = fused_linear(y, layer["out_w"], layer["out_b"], residual=x)
    return fused_linear(x, p["out"]["w"], p["out"]["b"])


def double_block(p, img, txt, vec, rope_tabs, num_heads):
    (im1, im2), (tm1, tm2) = vec
    cos_tab, sin_tab = rope_tabs
    Lt, Li = txt.shape[1], img.shape[1]

    img_qkv = fused_linear(img, p["img"]["qkv_w"], p["img"]["qkv_b"],
                           norm="layer", shift=im1["shift"], scale=im1["scale"])
    txt_qkv = fused_linear(txt, p["txt"]["qkv_w"], p["txt"]["qkv_b"],
                           norm="layer", shift=tm1["shift"], scale=tm1["scale"])
    img_q, img_k, img_v = split_qkv(img_qkv, num_heads)
    txt_q, txt_k, txt_v = split_qkv(txt_qkv, num_heads)

    q = jnp.concatenate([txt_q, img_q], axis=2)
    k = jnp.concatenate([txt_k, img_k], axis=2)
    v = jnp.concatenate([txt_v, img_v], axis=2)

    # Per-position QKNorm gammas (txt rows use the txt norm, img rows the img
    # norm) — fused into the attention kernel together with RoPE.
    qg = _gamma_table([(p["txt"]["qnorm"], Lt), (p["img"]["qnorm"], Li)])
    kg = _gamma_table([(p["txt"]["knorm"], Lt), (p["img"]["knorm"], Li)])
    attn = pallas_flash_attention(q, k, v, qg, kg, cos_tab, sin_tab)
    txt_attn, img_attn = attn[:, :Lt], attn[:, Lt:]

    img = fused_linear(img_attn, p["img"]["proj_w"], p["img"]["proj_b"],
                       gate=im1["gate"], residual=img)
    h = fused_linear(img, p["img"]["mlp0_w"], p["img"]["mlp0_b"],
                     norm="layer", shift=im2["shift"], scale=im2["scale"],
                     activation="gelu")
    img = fused_linear(h, p["img"]["mlp2_w"], p["img"]["mlp2_b"],
                       gate=im2["gate"], residual=img)

    txt = fused_linear(txt_attn, p["txt"]["proj_w"], p["txt"]["proj_b"],
                       gate=tm1["gate"], residual=txt)
    h = fused_linear(txt, p["txt"]["mlp0_w"], p["txt"]["mlp0_b"],
                     norm="layer", shift=tm2["shift"], scale=tm2["scale"],
                     activation="gelu")
    txt = fused_linear(h, p["txt"]["mlp2_w"], p["txt"]["mlp2_b"],
                       gate=tm2["gate"], residual=txt)
    return img, txt


def single_block(p, x, mod, rope_tabs, num_heads, hidden_size):
    cos_tab, sin_tab = rope_tabs
    N = x.shape[1]
    # lin1 fuses norm+mod prologue and applies GELU (column-masked epilogue)
    # to the mlp half only, so lin2 becomes a clean matmul+gate+residual.
    lin1 = fused_linear(x, p["lin1_w"], p["lin1_b"],
                        norm="layer", shift=mod["shift"], scale=mod["scale"],
                        gelu_from=3 * hidden_size)
    qkv, mlp = lin1[..., :3 * hidden_size], lin1[..., 3 * hidden_size:]
    q, k, v = split_qkv(qkv, num_heads)
    qg = _gamma_table([(p["qnorm"], N)])
    kg = _gamma_table([(p["knorm"], N)])
    attn = pallas_flash_attention(q, k, v, qg, kg, cos_tab, sin_tab)
    out = fused_linear(jnp.concatenate([attn, mlp], axis=-1),
                       p["lin2_w"], p["lin2_b"],
                       gate=mod["gate"], residual=x)
    return out


# ----------------------------------------------------------------------------
# Chroma forward
# ----------------------------------------------------------------------------
def forward_orig(params, cfg, img, img_ids, txt, txt_ids, timesteps, guidance):
    hs = cfg["hidden_size"]
    nh = cfg["num_heads"]
    bs = img.shape[0]

    img = img.astype(COMPUTE_DTYPE)
    txt = txt.astype(COMPUTE_DTYPE)

    img = fused_linear(img, params["img_in"]["w"], params["img_in"]["b"])

    mod_index_length = 344
    distill_timestep = timestep_embedding(timesteps, 16)
    distil_guidance = timestep_embedding(guidance, 16)
    modulation_index = timestep_embedding(
        jnp.arange(mod_index_length, dtype=jnp.float32), 32)
    modulation_index = jnp.broadcast_to(modulation_index[None],
                                        (bs, mod_index_length, 32))
    timestep_guidance = jnp.concatenate(
        [distill_timestep, distil_guidance], axis=1)[:, None, :]
    timestep_guidance = jnp.broadcast_to(timestep_guidance,
                                         (bs, mod_index_length, 32))
    input_vec = jnp.concatenate([timestep_guidance, modulation_index], axis=-1)
    mod_vectors = approximator(params["approx"], input_vec.astype(COMPUTE_DTYPE))

    txt = fused_linear(txt, params["txt_in"]["w"], params["txt_in"]["b"])
    ids = jnp.concatenate([txt_ids, img_ids], axis=1)
    rope_tabs = rope_tables(ids, cfg["axes_dim"], cfg["theta"])

    for i, blk in enumerate(params["double"]):
        double_mod = (get_modulations(mod_vectors, "double_img", i, cfg),
                      get_modulations(mod_vectors, "double_txt", i, cfg))
        img, txt = double_block(blk, img, txt, double_mod, rope_tabs, nh)

    img = jnp.concatenate([txt, img], axis=1)
    for i, blk in enumerate(params["single"]):
        single_mod = get_modulations(mod_vectors, "single", i, cfg)
        img = single_block(blk, img, single_mod, rope_tabs, nh, hs)
    img = img[:, txt.shape[1]:]

    shift, scale = get_modulations(mod_vectors, "final", 0, cfg)
    img = fused_linear(img, params["final"]["w"], params["final"]["b"],
                       norm="layer", shift=shift, scale=scale)
    return img


def chroma_forward(params, cfg, x, timestep, context, guidance):
    bs, c, h, w = x.shape
    ps = cfg["patch_size"]
    pad_h = (ps - h % ps) % ps
    pad_w = (ps - w % ps) % ps
    if pad_h or pad_w:
        x = jnp.pad(x, ((0, 0), (0, 0), (0, pad_h), (0, pad_w)), mode="wrap")

    h_len = (h + ps // 2) // ps
    w_len = (w + ps // 2) // ps
    # b c (h ph) (w pw) -> b (h w) (c ph pw)
    img = x.reshape(bs, c, h_len, ps, w_len, ps)
    img = img.transpose(0, 2, 4, 1, 3, 5).reshape(bs, h_len * w_len, c * ps * ps)

    img_ids = jnp.zeros((h_len, w_len, 3), jnp.float32)
    img_ids = img_ids.at[:, :, 1].add(
        jnp.arange(h_len, dtype=jnp.float32)[:, None])
    img_ids = img_ids.at[:, :, 2].add(
        jnp.arange(w_len, dtype=jnp.float32)[None, :])
    img_ids = jnp.broadcast_to(img_ids.reshape(1, h_len * w_len, 3),
                               (bs, h_len * w_len, 3))
    txt_ids = jnp.zeros((bs, context.shape[1], 3), jnp.float32)

    out = forward_orig(params, cfg, img, img_ids, context, txt_ids,
                       timestep, guidance)

    # b (h w) (c ph pw) -> b c (h ph) (w pw)
    c_out = out.shape[-1] // (ps * ps)
    out = out.astype(jnp.float32)
    out = out.reshape(bs, h_len, w_len, c_out, ps, ps)
    out = out.transpose(0, 3, 1, 4, 2, 5).reshape(bs, c_out, h_len * ps, w_len * ps)
    return out[:, :, :h, :w]


# ----------------------------------------------------------------------------
# Deterministic parameter init (synthetic; shapes follow the module __init__)
# ----------------------------------------------------------------------------
def init_params(key, cfg):
    hs = cfg["hidden_size"]
    nh = cfg["num_heads"]
    hd = hs // nh
    mlp_hidden = int(hs * cfg["mlp_ratio"])
    keys = iter(jax.random.split(key, 256))
    ph = _deinterleave_perm(hd)

    def w(shape, s=0.02):
        return (jax.random.normal(next(keys), shape, jnp.float32) * s
                ).astype(COMPUTE_DTYPE)

    def z(shape):
        return jnp.zeros(shape, COMPUTE_DTYPE)

    def ones(shape):
        return jnp.ones(shape, COMPUTE_DTYPE)

    p = {
        "img_in": {"w": w((cfg["in_channels"], hs)), "b": z((hs,))},
        "txt_in": {"w": w((cfg["context_in_dim"], hs)), "b": z((hs,))},
    }
    ap = {
        "in": {"w": w((cfg["in_dim"], cfg["hidden_dim"])),
               "b": z((cfg["hidden_dim"],))},
        "out": {"w": w((cfg["hidden_dim"], cfg["out_dim"])),
                "b": z((cfg["out_dim"],))},
        "layers": [],
    }
    for _ in range(cfg["n_layers"]):
        ap["layers"].append({
            "norm": ones((cfg["hidden_dim"],)),
            "in_w": w((cfg["hidden_dim"], cfg["hidden_dim"])),
            "in_b": z((cfg["hidden_dim"],)),
            "out_w": w((cfg["hidden_dim"], cfg["hidden_dim"])),
            "out_b": z((cfg["hidden_dim"],)),
        })
    p["approx"] = ap

    dbl = []
    for _ in range(cfg["depth"]):
        blk = {}
        for s in ("img", "txt"):
            qkv_w, qkv_b = deinterleave_qk_columns(w((hs, 3 * hs)),
                                                   z((3 * hs,)), hs, hd)
            blk[s] = {
                "qkv_w": qkv_w, "qkv_b": qkv_b,
                "qnorm": ones((hd,))[ph], "knorm": ones((hd,))[ph],
                "proj_w": w((hs, hs)), "proj_b": z((hs,)),
                "mlp0_w": w((hs, mlp_hidden)), "mlp0_b": z((mlp_hidden,)),
                "mlp2_w": w((mlp_hidden, hs)), "mlp2_b": z((hs,)),
            }
        dbl.append(blk)
    p["double"] = dbl

    sgl = []
    for _ in range(cfg["depth_single_blocks"]):
        lin1_w, lin1_b = deinterleave_qk_columns(
            w((hs, 3 * hs + mlp_hidden)), z((3 * hs + mlp_hidden,)), hs, hd)
        sgl.append({
            "lin1_w": lin1_w, "lin1_b": lin1_b,
            "lin2_w": w((hs + mlp_hidden, hs)), "lin2_b": z((hs,)),
            "qnorm": ones((hd,))[ph], "knorm": ones((hd,))[ph],
        })
    p["single"] = sgl

    # LastLayer(hidden_size, patch_size=1, out_channels) -> Linear(hs, out_channels)
    p["final"] = {"w": w((hs, cfg["out_channels"])),
                  "b": z((cfg["out_channels"],))}
    return p


# ----------------------------------------------------------------------------
if __name__ == "__main__":
    key = jax.random.PRNGKey(0)
    kp, kx, kt, kc, kg = jax.random.split(key, 5)

    params = init_params(kp, CFG)
    x = jax.random.normal(kx, (2, 4, 16, 16), jnp.float32)       # NCHW latent
    timestep = jax.random.uniform(kt, (2,), jnp.float32)
    context = jax.random.normal(kc, (2, 8, CFG["context_in_dim"]), jnp.float32)
    guidance = jax.random.uniform(kg, (2,), jnp.float32)

    out = chroma_forward(params, CFG, x, timestep, context, guidance)
    out = jax.block_until_ready(out)

    assert out.shape == (2, 4, 16, 16), out.shape
    assert bool(jnp.all(jnp.isfinite(out)))
    print("KERNEL_OK")
</pallas_src>

<mosaic_0001>
module attributes {stable_mosaic.version = 11 : i64} {
  func.func @_fused_linear_kernel(%arg0: i32, %arg1: i32, %arg2: i32, %arg3: i32, %arg4: memref<1x64x16xbf16, #tpu.memory_space<vmem>>, %arg5: memref<16x128xbf16, #tpu.memory_space<vmem>>, %arg6: memref<1x128xbf16, #tpu.memory_space<vmem>>, %arg7: memref<1x64x128xbf16, #tpu.memory_space<vmem>>) attributes {dimension_semantics = [#tpu.dimension_semantics<parallel>, #tpu.dimension_semantics<parallel>, #tpu.dimension_semantics<arbitrary>, #tpu.dimension_semantics<arbitrary>], iteration_bounds = array<i64: 2, 1, 1, 1>, scalar_prefetch = 0 : i64, scratch_operands = 0 : i64, tpu.core_type = #tpu.core_type<tc>, window_params = [{transform_indices = @transform_0, window_bounds = array<i64: 1, 64, 16>}, {transform_indices = @transform_1, window_bounds = array<i64: 16, 128>}, {transform_indices = @transform_2, window_bounds = array<i64: 1, 128>}, {transform_indices = @transform_3, window_bounds = array<i64: 1, 64, 128>}]} {
    %c0 = arith.constant 0 : index
    %c0_0 = arith.constant 0 : index
    %c0_1 = arith.constant 0 : index
    %0 = vector.load %arg4[%c0, %c0_0, %c0_1] : memref<1x64x16xbf16, #tpu.memory_space<vmem>>, vector<1x64x16xbf16>
    %1 = vector.shape_cast %0 : vector<1x64x16xbf16> to vector<64x16xbf16>
    %c0_2 = arith.constant 0 : index
    %c0_3 = arith.constant 0 : index
    %2 = vector.load %arg5[%c0_2, %c0_3] : memref<16x128xbf16, #tpu.memory_space<vmem>>, vector<16x128xbf16>
    %cst = arith.constant dense<0.000000e+00> : vector<64x128xf32>
    %3 = tpu.matmul %1, %2, %cst {dimension_numbers = #tpu.dot_dimension_numbers<[1], [0], [0], [1], [0, 0, 1, 1], [], []>} : vector<64x16xbf16>, vector<16x128xbf16>, vector<64x128xf32> -> vector<64x128xf32>
    %c0_4 = arith.constant 0 : index
    %c0_5 = arith.constant 0 : index
    %4 = vector.load %arg6[%c0_4, %c0_5] : memref<1x128xbf16, #tpu.memory_space<vmem>>, vector<1x128xbf16>
    %5 = arith.extf %4 : vector<1x128xbf16> to vector<1x128xf32>
    %6 = vector.broadcast %5 : vector<1x128xf32> to vector<64x128xf32>
    %7 = arith.addf %3, %6 : vector<64x128xf32>
    %8 = arith.truncf %7 : vector<64x128xf32> to vector<64x128xbf16>
    %c0_6 = arith.constant 0 : index
    %c0_7 = arith.constant 0 : index
    %c0_8 = arith.constant 0 : index
    %9 = vector.load %arg7[%c0_6, %c0_7, %c0_8] : memref<1x64x128xbf16, #tpu.memory_space<vmem>>, vector<1x64x128xbf16>
    %10 = vector.shape_cast %9 : vector<1x64x128xbf16> to vector<64x128xbf16>
    %11 = vector.shape_cast %8 : vector<64x128xbf16> to vector<1x64x128xbf16>
    tpu.vector_store %arg7[%c0_6, %c0_7, %c0_8], %11 {strides = array<i32>} : memref<1x64x128xbf16, #tpu.memory_space<vmem>>, vector<1x64x128xbf16>,
    return
  }
  func.func @transform_0(%arg0: i32, %arg1: i32, %arg2: i32, %arg3: i32) -> (i32, i32, i32) {
    %c0_i32 = arith.constant 0 : i32
    return %arg0, %arg1, %arg3 : i32, i32, i32
  }
  func.func @transform_1(%arg0: i32, %arg1: i32, %arg2: i32, %arg3: i32) -> (i32, i32) {
    %c0_i32 = arith.constant 0 : i32
    return %arg3, %arg2 : i32, i32
  }
  func.func @transform_2(%arg0: i32, %arg1: i32, %arg2: i32, %arg3: i32) -> (i32, i32) {
    %c0_i32 = arith.constant 0 : i32
    %c0_i32_0 = arith.constant 0 : i32
    return %c0_i32, %arg2 : i32, i32
  }
  func.func @transform_3(%arg0: i32, %arg1: i32, %arg2: i32, %arg3: i32) -> (i32, i32, i32) {
    %c0_i32 = arith.constant 0 : i32
    return %arg0, %arg1, %arg2 : i32, i32, i32
  }
}

</mosaic_0001>

<bundles_post_ra>
// kernel: tpu_custom_call.1
= control target key start
LH: loop header
LB: loop body
LE: loop exit
PB: predicated region body
PF: predicated region fallthrough
CT: control target
= control target key end

     0   :  { %8 = vsyncpa [#allocation3], 0  ;;  %s943_s0 = inlined_call_operand.vmem [shape: bf16[2,64,16], index: 0, kind: input, shape index: {}]   ;;  %s944_s1 = inlined_call_operand.vmem [shape: bf16[16,128], index: 1, kind: input, shape index: {}]   ;;  %s945_s2 = inlined_call_operand.vmem [shape: bf16[1,128], index: 2, kind: input, shape index: {}]   ;;  %s946_s3 = inlined_call_operand.hbm [shape: bf16[2,64,128], index: 3, kind: output, shape index: {}]  }
   0x1   :  { %10 = vsyncpa [#allocation3 + $0x1], 0  ;;  %s818_s12 = smov 0   ;;  %s820_s13 = smov 0  }
   0x2   :  { %s822_s14 = smov 0   ;;  %s824_s15 = smov 0  }
   0x3   :  { %s826_s16 = smov 0   ;;  %s828_s17 = smov 0  }
   0x4 LB: > { %s571_s18 = sadd.s32 4294967295, %s793_s17   ;;  %s572_s19 = sadd.s32 4294967294, %s793_s17   ;;  %s793_s17 = sphi %s828_s17, %s16_s17   ;;  %s789_s16 = sphi %s826_s16, %s953_s16   ;;  %s785_s15 = sphi %s824_s15, %s952_s15   ;;  %s781_s14 = sphi %s822_s14, %s951_s14   ;;  %s777_s13 = sphi %s820_s13, %s950_s13   ;;  %s773_s12 = sphi %s818_s12, %s949_s12  }
   0x5   : > { %s42_s20 = sadd.s32 1, %s789_s16  ;;  %s137_s21 = sadd.s32 1, %s781_s14 }
   0x6   : > { %p44_p0 = scmp.ge.s32.totalorder %s42_s20, 2  ;;  %p147_p1 = scmp.ne.s32.totalorder %s781_s14, %s777_s13 }
   0x7   : > { %p148_p2 = scmp.eq.s32.totalorder %s571_s18, 1  ;;  %p153_p3 = scmp.ne.s32.totalorder %s777_s13, %s773_s12 }
   0x8   : > { %s955_s20 = smov (%p44_p0, %s42_s20), 0  ;;  %p154_p5 = scmp.eq.s32.totalorder %s572_s19, 1 }
   0x9   : > { %p858_p4 = por %p148_p2, %p147_p1  ;;  %s130_s23 = ssub.s32 %s789_s16, %s955_s20 }
   0xa   : > { %p577_p6 = scmp.ge.s32.totalorder %s793_s17, 1  ;;  %p135_p7 = scmp.eq.s32.totalorder %s130_s23, 0 }
   0xb   : > { %p865_p8 = por %p154_p5, %p153_p3  ;;  %p206_p9 = scmp.lt.s32.totalorder %s793_s17, 3 }
   0xc   : > { %s871_s25 = scalar_select %p135_p7, %s781_s14, %s137_s21  }
   0xd   : > { %p207_p10 = pnand %p577_p6, %p206_p9 }
   0xe   : > { %v710_v0 = vld [vmem:[%s944_s1] sm:$0xff] (!%p207_p10)   ;;  %p249_p11 = scmp.lt.s32.totalorder (!%p207_p10), %s785_s15, 1  ;;  %vm317_vm0 = vcmask (!%p207_p10), 130048   ;;  %v287_v5 = vlaneseq (!%p207_p10)  ;;  %s245_s8 = sand.u32 (!%p207_p10), 1, %s777_s13  }
   0xf   : > { %210 = sbr.rel (%p207_p10) target bundleno = 262 (0x106), region = 32  ;;  %641 = vmatprep.subr.bf16.mxu0 (!%p207_p10), %v710_v0  ;;  %651 = vmatprep.subr.bf16.mxu1 (!%p207_p10), %v710_v0  ;;  %v285_v7 = vld [vmem:[%s945_s2] sm:$0x1] (!%p207_p10)  ;;  %s578_s9 = sshll.u32 (!%p207_p10), %s245_s8, 5 }
  0x10   : > { %642 = vmatpush3.bf16.msra.mxu0 (!%p207_p10), %v710_v0  ;;  %652 = vmatpush3.bf16.msra.mxu1 (!%p207_p10), %v710_v0  ;;  %v288_v6 = vshrl.u32 (!%p207_p10), %v287_v5, 7  ;;  %v286_v8 = vunpack.c.l.bf16 (!%p207_p10), %v285_v7  ;;  %s247_s10 = scalar_lea.vmem (!%p207_p10), [#allocation2], %s578_s9  ;;  %s612_s18 = sshll.u32 (!%p207_p10), %s785_s15, 9 }
  0x11   : > { %s452_s11 = sshll.u32 (!%p207_p10), %s247_s10, 4  ;;  %s897_s23 = scalar_lea.sflag (!%p207_p10), [#allocation3], %s245_s8  ;;  %s888_s11 = int_to_ptr.vmem [resolvable:$true] %s452_s11 }
  0x12   : > { %v289_v9 = vsub.s32 (!%p207_p10), 0, %v288_v6  ;;  %s715_s26 = scalar_lea.vmem (!%p207_p10), %s888_s11, 512  ;;  %s795_s27 = smov (!%p207_p10), [#allocation2]  }
  0x13   : > { %p716_p12 = scmp.ne.s32.totalorder (!%p207_p10), %s888_s11, %s715_s26 }
  0x14   : > { %v290_v10 = vrot.slane (!%p207_p10), %v286_v8, %v289_v9 }
  0x15   : > { %p717_p13 = pnand (!%p207_p10), %p716_p12, %p858_p4 }
  0x16   : > { %s250_s28 = scalar_select %p249_p11, %s785_s15, 1 }
  0x17   : > { %s893_s15 = scalar_lea.hbm %s946_s3, %s612_s18  ;;  %p718_p0 = pneg %p717_p13 }
  0x18   : > { %s603_s29 = sshll.u32 %s250_s28, 5  ;;  %s719_s28 = sshll.u32 %s795_s27, 4  ;;  %s720_s28 = int_to_ptr.vmem [resolvable:$false] %s719_s28 }
  0x19   : > { %s259_s5 = scalar_lea.vmem %s943_s0, %s603_s29  ;;  %s721_s29 = scalar_lea.vmem %s720_s28, 1024 }
  0x1a   : > { %v711_v1 = vld [vmem:[%s259_s5] sm:$0xff]   ;;  %v712_v2 = vld [vmem:[%s259_s5 + $0x10] sm:$0xff]   ;;  %v713_v3 = vld [vmem:[%s259_s5 + $0x8] sm:$0xff]   ;;  %p722_p1 = scmp.lt.s32.totalorder %s888_s11, %s720_s28  ;;  %p723_p2 = scmp.lt.s32.totalorder %s721_s29, %s715_s26 }
  0x1b   : > { %643 = vmatprep.mubr.msk.bf16.mxu0 %vm317_vm0, %v711_v1  ;;  %647 = vmatprep.mubr.msk.bf16.mxu1 %vm317_vm0, %v712_v2  ;;  %v714_v4 = vld [vmem:[%s259_s5 + $0x18] sm:$0xff]  }
  0x1c   : > { %644 = vmatmul.mubr.msk.bf16.vlgmr.msra.gmra.mrb[0].mxu0 %vm317_vm0, %v713_v3  ;;  %648 = vmatmul.mubr.msk.bf16.vlgmr.msra.gmra.mrb[0].mxu1 %vm317_vm0, %v714_v4  ;;  %p724_p3 = por %p723_p2, %p722_p1 }
  0x1e   : > { %p725_p5 = pnand %p724_p3, %p718_p0 }
  0xef   : > { %v645_v11 = vpop.f32.mrb[0].mxu0  ;;  %v649_v12 = vpop.f32.mrb[0].mxu1 }
  0xf0   : > { %v364_v13 = vpop.f32.mrb[1].mxu0  ;;  %v380_v14 = vpop.f32.mrb[1].mxu1  ;;  %v373_v16 = vadd.f32 %v645_v11, %v290_v10  ;;  %v389_v20 = vadd.f32 %v649_v12, %v290_v10 }
  0xf1   : > { %v646_v15 = vpop.f32.mrb[2].mxu0  ;;  %v650_v18 = vpop.f32.mrb[2].mxu1  ;;  %v365_v21 = vadd.f32 %v364_v13, %v290_v10  ;;  %v381_v25 = vadd.f32 %v380_v14, %v290_v10 }
  0xf2   : > { %v376_v17 = vadd.f32 %v646_v15, %v290_v10  ;;  %v367_v19 = vpop.f32.mrb[3].mxu0  ;;  %v392_v22 = vadd.f32 %v650_v18, %v290_v10  ;;  %v383_v24 = vpop.f32.mrb[3].mxu1 }
  0xf3   : > { %v368_v23 = vadd.f32 %v367_v19, %v290_v10  ;;  %v384_v27 = vadd.f32 %v383_v24, %v290_v10 }
  0xf4   : > { %v621_v26 = vpack.c.bf16 %v376_v17, %v373_v16  ;;  %v631_v28 = vpack.c.bf16 %v392_v22, %v389_v20 }
  0xf5   : > { %v616_v29 = vpack.c.bf16 %v368_v23, %v365_v21  ;;  %v626_v30 = vpack.c.bf16 %v384_v27, %v381_v25 }
  0xf6   : > { %633 = vst [vmem:[%s247_s10 + $0x8] sm:$0xff] %v621_v26   ;;  %635 = vst [vmem:[%s247_s10 + $0x18] sm:$0xff] %v631_v28  }
  0xf7   : > { %617 = vst [vmem:[%s247_s10] sm:$0xff] %v616_v29   ;;  %634 = vst [vmem:[%s247_s10 + $0x10] sm:$0xff] %v626_v30  }
  0xf8   : > { %728 = shalt.err (!%p725_p5)
}
  0xf9   : > { %s729_s30 = scalar_lea.hbm %s893_s15, 512  ;;  %s733_s6 = scalar_lea.hbm %s946_s3, 1024 }
  0xfa   : > { %p730_p6 = scmp.ne.s32.totalorder %s893_s15, %s729_s30  ;;  %p734_p10 = scmp.lt.u32.totalorder %s893_s15, %s946_s3 }
  0xfb   : > { %p735_p11 = scmp.lt.u32.totalorder %s733_s6, %s729_s30  ;;  %p737_p13 = scmp.lt.u32.totalorder %s729_s30, %s893_s15 }
  0xfc   : > { %p731_p7 = pnand %p730_p6, %p858_p4 }
  0xfd   : > { %p736_p12 = por %p735_p11, %p734_p10 }
  0xfe   : > { %p732_p9 = pneg %p731_p7 }
  0xff   : > { %p738_p0 = por %p737_p13, %p736_p12 }
 0x101   : > { %p739_p1 = pnand %p738_p0, %p732_p9 }
 0x103   : > { %742 = shalt.err (!%p739_p1)
}
 0x104   : > { %s796_s9 = smov 64   ;;  %s797_s10 = smov 4  }
 0x105   : > { %653 = dma.vmem_to_hbm [thread:$0]  (%p858_p4), %s888_s11, 512, %s893_s15, %s897_s23, %s796_s9, %s796_s9, %s797_s10  }
 0x106 PF: > { %p659_p2 = scmp.ge.s32.totalorder %s793_s17, 2  ;;  %s467_s18 = sand.u32 1, %s773_s12  }
 0x107   : > { %s468_s19 = scalar_lea.sflag [#allocation3], %s467_s18 }
 0x108   : > { %p656_p3 = pnand %p659_p2, %p865_p8 }
 0x10a   : > { %768 = dma.done.wait (!%p656_p3), %s468_s19, 512  }
 0x10b   : > { %770 = vsyncadd (!%p656_p3), %s468_s19, 4294966784  ;;  %s16_s17 = sadd.s32 1, %s793_s17   ;;  %s949_s12 = smov %s777_s13 }
 0x10c   : > { %p13_p5 = scmp.ge.s32.totalorder %s16_s17, 4   ;;  %s950_s13 = smov %s781_s14 }
 0x10d   : > { %s951_s14 = smov %s871_s25  ;;  %s952_s15 = smov %s789_s16 }
 0x10e   : > { %s953_s16 = smov %s955_s20  ;;  %15 = sbr.rel (!%p13_p5) target bundleno = 4 (0x4), region = 73 }
 0x115   :  { %473 = vsyncpa [#allocation3], 1 }
 0x116   :  { %475 = vsyncpa [#allocation3 + $0x1], 1 }

</bundles_post_ra>
